<compile_context>
chip_gen: v7x
topology: tpu7x:2x2x1
jax: 0.10.0
libtpu: 0.0.40
codegen_flags: <defaults>
</compile_context>

<pallas_src>
import jax
import jax.numpy as jnp
from jax.experimental import pallas as pl
from jax.experimental.pallas import tpu as pltpu


# ----------------------------------------------------------------------------
# Fused kernel: LM-head projection (x3) + masked CE + 4 KL divergences
# Emits one lane-dense (8, 128) partial-sum block per token tile:
#   lanes [0..5] = [sum CE, sum KL(a||c), sum KL(c||a), sum KL(r||c), sum KL(c||r), n_active]
# ----------------------------------------------------------------------------
def _fused_distill_kernel(
    labels_ref,                     # (tt, 1)  int32
    hc_ref, ha_ref, hr_ref,         # (tt, D)  bf16
    wc_ref, wa_ref, wr_ref,         # (D, V)   bf16   (resident across grid)
    bc_ref, ba_ref, br_ref,         # (1, V)   f32    (resident across grid)
    out_ref,                        # (8, 128) f32    partial sums for this tile
):
    labels = labels_ref[...]                                  # (tt, 1) int32
    mask = (labels != -100).astype(jnp.float32)               # (tt, 1)
    safe_lab = jnp.where(labels == -100, 0, labels)           # (tt, 1)

    def logits(h_ref, w_ref, b_ref):
        return (
            jnp.dot(h_ref[...], w_ref[...], preferred_element_type=jnp.float32)
            + b_ref[...]
        )

    x_c = logits(hc_ref, wc_ref, bc_ref)                      # (tt, V) f32
    x_a = logits(ha_ref, wa_ref, ba_ref)
    x_r = logits(hr_ref, wr_ref, br_ref)
    TT, V = x_c.shape

    def softmax_stats(x):
        m = jnp.max(x, axis=-1, keepdims=True)
        e = jnp.exp(x - m)                                    # single exp per stream
        s = jnp.sum(e, axis=-1, keepdims=True)
        lse = m + jnp.log(s)
        rcp = pl.reciprocal(s, approx=True)                   # EUP slot, ~free
        return e, lse, rcp

    e_c, lse_c, rcp_c = softmax_stats(x_c)
    e_a, lse_a, rcp_a = softmax_stats(x_a)
    e_r, lse_r, rcp_r = softmax_stats(x_r)

    # d_ac = log_softmax(x_a) - log_softmax(x_c); shared by KL(a||c) and KL(c||a).
    d_ac = (x_a - x_c) - (lse_a - lse_c)
    d_rc = (x_r - x_c) - (lse_r - lse_c)

    kl_ac = rcp_a * jnp.sum(e_a * d_ac, axis=-1, keepdims=True)    # KL(align || cor)
    kl_ca = -rcp_c * jnp.sum(e_c * d_ac, axis=-1, keepdims=True)   # KL(cor   || align)
    kl_rc = rcp_r * jnp.sum(e_r * d_rc, axis=-1, keepdims=True)    # KL(rev   || cor)
    kl_cr = -rcp_c * jnp.sum(e_c * d_rc, axis=-1, keepdims=True)   # KL(cor   || rev)

    onehot = (
        jax.lax.broadcasted_iota(jnp.int32, (TT, V), 1) == safe_lab
    ).astype(jnp.float32)
    ce = lse_c - jnp.sum(onehot * x_c, axis=-1, keepdims=True)     # -log_softmax[label]

    s_ce = jnp.sum(ce * mask)
    s_ac = jnp.sum(kl_ac * mask)
    s_ca = jnp.sum(kl_ca * mask)
    s_rc = jnp.sum(kl_rc * mask)
    s_cr = jnp.sum(kl_cr * mask)
    s_n = jnp.sum(mask)

    lane = jax.lax.broadcasted_iota(jnp.int32, out_ref.shape, 1)
    out_ref[...] = (
        jnp.where(lane == 0, s_ce, 0.0)
        + jnp.where(lane == 1, s_ac, 0.0)
        + jnp.where(lane == 2, s_ca, 0.0)
        + jnp.where(lane == 3, s_rc, 0.0)
        + jnp.where(lane == 4, s_cr, 0.0)
        + jnp.where(lane == 5, s_n, 0.0)
    )


def _pick_token_tile(T, V, vmem_budget_bytes):
    # ~12 live (tt, V) f32 temporaries at peak (3 logits, 3 exp, 2 shared log-ratios,
    # products feeding the reductions).  Pick tt = largest multiple of 8 dividing T
    # that fits the budget (conservative so it also fits v7x's 64 MiB/TC).
    cap = max(8, (vmem_budget_bytes // (12 * V * 4)) // 8 * 8)
    tt = min(cap, 512, T)
    tt = max(8, (tt // 8) * 8)
    while T % tt != 0:
        tt -= 8
    return tt


def fused_distill_sums(labels_flat, h_cor, h_al, h_rev,
                       w_cor, w_al, w_rev, b_cor, b_al, b_rev,
                       *, tt=None, vmem_budget_bytes=40 * 1024 * 1024):
    T, D = h_cor.shape
    V = w_cor.shape[1]
    assert T % 8 == 0 and V % 128 == 0
    if tt is None:
        tt = _pick_token_tile(T, V, vmem_budget_bytes)
    nt = T // tt
    labels2d = labels_flat.reshape(T, 1).astype(jnp.int32)

    hid_spec = pl.BlockSpec((tt, D), lambda i: (i, 0))
    w_spec = pl.BlockSpec((D, V), lambda i: (0, 0))     # constant index -> resident
    b_spec = pl.BlockSpec((1, V), lambda i: (0, 0))     # constant index -> resident

    cost = pl.CostEstimate(
        flops=int(3 * 2 * T * D * V + 40 * T * V),
        transcendentals=int(3 * T * V + 6 * T),
        bytes_accessed=int(T * 4 + 3 * T * D * 2 + 3 * D * V * 2 + 3 * V * 4
                           + nt * 8 * 128 * 4),
    )
    vmem_est = (3 * D * V * 2 + 3 * V * 4
                + 2 * (3 * tt * D * 2 + tt * 4 + 8 * 128 * 4)
                + 12 * tt * V * 4)
    vmem_limit = int(vmem_est * 1.25) if vmem_est > 24 * 1024 * 1024 else None

    partial = pl.pallas_call(
        _fused_distill_kernel,
        out_shape=jax.ShapeDtypeStruct((nt * 8, 128), jnp.float32),
        grid_spec=pltpu.PrefetchScalarGridSpec(
            num_scalar_prefetch=0,
            grid=(nt,),
            in_specs=[
                pl.BlockSpec((tt, 1), lambda i: (i, 0)),     # labels
                hid_spec, hid_spec, hid_spec,                # hidden states (bf16)
                w_spec, w_spec, w_spec,                      # LM-head weights (bf16)
                b_spec, b_spec, b_spec,                      # biases (f32)
            ],
            out_specs=pl.BlockSpec((8, 128), lambda i: (i, 0)),
        ),
        compiler_params=pltpu.CompilerParams(
            dimension_semantics=("parallel",),
            vmem_limit_bytes=vmem_limit,
        ),
        cost_estimate=cost,
    )(labels2d, h_cor, h_al, h_rev, w_cor, w_al, w_rev, b_cor, b_al, b_rev)

    # Tiny final reduction in plain JAX (lanes 0..5 carry the sums).
    return partial.reshape(nt, 8, 128)[:, 0, :].sum(axis=0)


# ----------------------------------------------------------------------------
# Glue: tiny stand-in "BART" + AlignmentDistillBART.forward semantics
# ----------------------------------------------------------------------------
def alignment_distill_forward(
    params,
    input_ids,
    attention_mask=None,
    align_input_ids=None,
    align_attention_mask=None,
    align_reverse_input_ids=None,
    align_reverse_attention_mask=None,
    labels=None,
    kl_loss_weight=0.1,
    kl_loss_type="both",
    distill_way="average_loss",
    alpha=0.5,
):
    assert kl_loss_type in ("both", "forward-kl", "reverse-kl")

    def hidden_of(p, ids):
        # embedding lookup (glue); projection happens inside the fused kernel
        return jnp.take(p["emb"], ids.reshape(-1), axis=0).astype(jnp.bfloat16)

    has_teachers = (kl_loss_weight > 0) and (align_input_ids is not None)

    h_cor = hidden_of(params["cor"], input_ids)
    w_cor = params["cor"]["w"].astype(jnp.bfloat16)
    b_cor = params["cor"]["b"].reshape(1, -1).astype(jnp.float32)

    if has_teachers:
        al_p, rev_p = params["align"], params["align_rev"]
        al_ids, rev_ids = align_input_ids, align_reverse_input_ids
    else:
        # KL terms are unused in this branch; reuse student inputs as placeholders.
        al_p, rev_p = params["cor"], params["cor"]
        al_ids, rev_ids = input_ids, input_ids

    # teacher models are frozen / eval / no_grad in the reference
    h_al = jax.lax.stop_gradient(hidden_of(al_p, al_ids))
    h_rev = jax.lax.stop_gradient(hidden_of(rev_p, rev_ids))
    w_al = jax.lax.stop_gradient(al_p["w"].astype(jnp.bfloat16))
    w_rev = jax.lax.stop_gradient(rev_p["w"].astype(jnp.bfloat16))
    b_al = jax.lax.stop_gradient(al_p["b"].reshape(1, -1).astype(jnp.float32))
    b_rev = jax.lax.stop_gradient(rev_p["b"].reshape(1, -1).astype(jnp.float32))

    sums = fused_distill_sums(labels.reshape(-1), h_cor, h_al, h_rev,
                              w_cor, w_al, w_rev, b_cor, b_al, b_rev)

    n_active = jnp.maximum(sums[5], 1.0)   # guard: all labels == -100
    ce = sums[0] / n_active      # CrossEntropyLoss(ignore_index=-100) mean
    kl_ac = sums[1] / n_active   # calculate_kl_loss(cor,   align) = KL(align || cor)
    kl_ca = sums[2] / n_active   # calculate_kl_loss(align, cor)   = KL(cor   || align)
    kl_rc = sums[3] / n_active   # calculate_kl_loss(cor,   rev)   = KL(rev   || cor)
    kl_cr = sums[4] / n_active   # calculate_kl_loss(rev,   cor)   = KL(cor   || rev)

    lm_loss = jax.lax.stop_gradient(ce)    # cor_outputs.loss.clone().detach()
    loss = ce

    if has_teachers:
        if kl_loss_type == "both":
            align_kl = 0.5 * (kl_ac + kl_ca)
            rev_kl = 0.5 * (kl_rc + kl_cr)
        elif kl_loss_type == "forward-kl":
            align_kl, rev_kl = kl_ac, kl_rc
        else:  # reverse-kl
            align_kl, rev_kl = kl_ca, kl_cr
        loss = loss + kl_loss_weight * (alpha * align_kl + (1.0 - alpha) * rev_kl)

    return {"loss": loss, "lm_loss": lm_loss}


# ----------------------------------------------------------------------------
# Pure-JAX reference (same bf16-cast inputs) for a correctness check
# ----------------------------------------------------------------------------
def _reference_forward(params, input_ids, align_ids, rev_ids, labels,
                       kl_loss_weight, kl_loss_type, alpha):
    def logits_of(p, ids):
        h = jnp.take(p["emb"], ids.reshape(-1), axis=0)
        h = h.astype(jnp.bfloat16).astype(jnp.float32)
        w = p["w"].astype(jnp.bfloat16).astype(jnp.float32)
        return h @ w + p["b"].reshape(1, -1)

    xc = logits_of(params["cor"], input_ids)
    xa = logits_of(params["align"], align_ids)
    xr = logits_of(params["align_rev"], rev_ids)
    lab = labels.reshape(-1)
    m = (lab != -100).astype(jnp.float32)
    n = jnp.maximum(m.sum(), 1.0)
    lpc = jax.nn.log_softmax(xc, axis=-1)
    lpa = jax.nn.log_softmax(xa, axis=-1)
    lpr = jax.nn.log_softmax(xr, axis=-1)
    pc, pa, pr = jnp.exp(lpc), jnp.exp(lpa), jnp.exp(lpr)
    safe = jnp.where(lab == -100, 0, lab)
    ce = (-jnp.take_along_axis(lpc, safe[:, None], axis=1)[:, 0] * m).sum() / n

    def kl(p_t, lp_t, lp_s):   # KL(t || s), batchmean over active rows
        return ((p_t * (lp_t - lp_s)).sum(-1) * m).sum() / n

    kl_ac, kl_ca = kl(pa, lpa, lpc), kl(pc, lpc, lpa)
    kl_rc, kl_cr = kl(pr, lpr, lpc), kl(pc, lpc, lpr)
    if kl_loss_type == "both":
        a_kl, r_kl = 0.5 * (kl_ac + kl_ca), 0.5 * (kl_rc + kl_cr)
    elif kl_loss_type == "forward-kl":
        a_kl, r_kl = kl_ac, kl_rc
    else:
        a_kl, r_kl = kl_ca, kl_cr
    return ce + kl_loss_weight * (alpha * a_kl + (1.0 - alpha) * r_kl), ce


# ----------------------------------------------------------------------------
# Main
# ----------------------------------------------------------------------------
if __name__ == "__main__":
    B, S, D, V = 2, 8, 32, 256  # batch, seq, hidden, vocab
    T = B * S

    key = jax.random.PRNGKey(0)
    keys = jax.random.split(key, 16)

    def make_params(k0, k1, k2):
        return {
            "emb": 0.25 * jax.random.normal(k0, (V, D), jnp.float32),
            "w": 0.25 * jax.random.normal(k1, (D, V), jnp.float32),
            "b": 0.02 * jax.random.normal(k2, (1, V), jnp.float32),
        }

    params = {
        "cor": make_params(keys[0], keys[1], keys[2]),
        "align": make_params(keys[3], keys[4], keys[5]),
        "align_rev": make_params(keys[6], keys[7], keys[8]),
    }

    input_ids = jax.random.randint(keys[9], (B, S), 0, V, dtype=jnp.int32)
    align_input_ids = jax.random.randint(keys[10], (B, S), 0, V, dtype=jnp.int32)
    align_reverse_input_ids = jax.random.randint(keys[11], (B, S), 0, V, dtype=jnp.int32)
    attention_mask = jnp.ones((B, S), jnp.int32)

    labels = jax.random.randint(keys[12], (B, S), 0, V, dtype=jnp.int32)
    labels = labels.at[:, :2].set(-100)   # ignored positions

    out = alignment_distill_forward(
        params,
        input_ids=input_ids,
        attention_mask=attention_mask,
        align_input_ids=align_input_ids,
        align_attention_mask=attention_mask,
        align_reverse_input_ids=align_reverse_input_ids,
        align_reverse_attention_mask=attention_mask,
        labels=labels,
        kl_loss_weight=0.1,
        kl_loss_type="both",
        distill_way="average_loss",
        alpha=0.5,
    )

    loss = jax.block_until_ready(out["loss"])
    lm_loss = jax.block_until_ready(out["lm_loss"])
    assert jnp.isfinite(loss) and jnp.isfinite(lm_loss)

    ref_loss, ref_lm = _reference_forward(
        params, input_ids, align_input_ids, align_reverse_input_ids, labels,
        0.1, "both", 0.5)
    assert jnp.allclose(loss, ref_loss, rtol=5e-2, atol=1e-3), (loss, ref_loss)
    assert jnp.allclose(lm_loss, ref_lm, rtol=5e-2, atol=1e-3), (lm_loss, ref_lm)

    print("KERNEL_OK")
</pallas_src>

<mosaic_0001>
module attributes {stable_mosaic.version = 11 : i64} {
  func.func @_fused_distill_kernel(%arg0: i32, %arg1: memref<16x1xi32, #tpu.memory_space<vmem>>, %arg2: memref<16x32xbf16, #tpu.memory_space<vmem>>, %arg3: memref<16x32xbf16, #tpu.memory_space<vmem>>, %arg4: memref<16x32xbf16, #tpu.memory_space<vmem>>, %arg5: memref<32x256xbf16, #tpu.memory_space<vmem>>, %arg6: memref<32x256xbf16, #tpu.memory_space<vmem>>, %arg7: memref<32x256xbf16, #tpu.memory_space<vmem>>, %arg8: memref<1x256xf32, #tpu.memory_space<vmem>>, %arg9: memref<1x256xf32, #tpu.memory_space<vmem>>, %arg10: memref<1x256xf32, #tpu.memory_space<vmem>>, %arg11: memref<8x128xf32, #tpu.memory_space<vmem>>) attributes {dimension_semantics = [#tpu.dimension_semantics<parallel>], iteration_bounds = array<i64: 1>, scalar_prefetch = 0 : i64, scratch_operands = 0 : i64, tpu.core_type = #tpu.core_type<tc>, window_params = [{transform_indices = @transform_0, window_bounds = array<i64: 16, 1>}, {transform_indices = @transform_1, window_bounds = array<i64: 16, 32>}, {transform_indices = @transform_2, window_bounds = array<i64: 16, 32>}, {transform_indices = @transform_3, window_bounds = array<i64: 16, 32>}, {pipeline_mode = #tpu.pipeline_mode<synchronous>, transform_indices = @transform_4, window_bounds = array<i64: 32, 256>}, {pipeline_mode = #tpu.pipeline_mode<synchronous>, transform_indices = @transform_5, window_bounds = array<i64: 32, 256>}, {pipeline_mode = #tpu.pipeline_mode<synchronous>, transform_indices = @transform_6, window_bounds = array<i64: 32, 256>}, {pipeline_mode = #tpu.pipeline_mode<synchronous>, transform_indices = @transform_7, window_bounds = array<i64: 1, 256>}, {pipeline_mode = #tpu.pipeline_mode<synchronous>, transform_indices = @transform_8, window_bounds = array<i64: 1, 256>}, {pipeline_mode = #tpu.pipeline_mode<synchronous>, transform_indices = @transform_9, window_bounds = array<i64: 1, 256>}, {transform_indices = @transform_10, window_bounds = array<i64: 8, 128>}]} {
    %c0 = arith.constant 0 : index
    %c0_0 = arith.constant 0 : index
    %0 = vector.load %arg1[%c0, %c0_0] : memref<16x1xi32, #tpu.memory_space<vmem>>, vector<16x1xi32>
    %c-100_i32 = arith.constant -100 : i32
    %1 = vector.broadcast %c-100_i32 : i32 to vector<16x1xi32>
    %2 = arith.cmpi ne, %0, %1 : vector<16x1xi32>
    %3 = arith.extui %2 : vector<16x1xi1> to vector<16x1xi32>
    %4 = arith.sitofp %3 : vector<16x1xi32> to vector<16x1xf32>
    %c-100_i32_1 = arith.constant -100 : i32
    %5 = vector.broadcast %c-100_i32_1 : i32 to vector<16x1xi32>
    %6 = arith.cmpi eq, %0, %5 : vector<16x1xi32>
    %c0_i32 = arith.constant 0 : i32
    %7 = vector.broadcast %c0_i32 : i32 to vector<16x1xi32>
    %8 = arith.select %6, %7, %0 : vector<16x1xi1>, vector<16x1xi32>
    %c0_2 = arith.constant 0 : index
    %c0_3 = arith.constant 0 : index
    %9 = vector.load %arg2[%c0_2, %c0_3] : memref<16x32xbf16, #tpu.memory_space<vmem>>, vector<16x32xbf16>
    %c0_4 = arith.constant 0 : index
    %c0_5 = arith.constant 0 : index
    %10 = vector.load %arg5[%c0_4, %c0_5] : memref<32x256xbf16, #tpu.memory_space<vmem>>, vector<32x256xbf16>
    %cst = arith.constant dense<0.000000e+00> : vector<16x256xf32>
    %11 = tpu.matmul %9, %10, %cst {dimension_numbers = #tpu.dot_dimension_numbers<[1], [0], [0], [1], [0, 0, 1, 1], [], []>} : vector<16x32xbf16>, vector<32x256xbf16>, vector<16x256xf32> -> vector<16x256xf32>
    %c0_6 = arith.constant 0 : index
    %c0_7 = arith.constant 0 : index
    %12 = vector.load %arg8[%c0_6, %c0_7] : memref<1x256xf32, #tpu.memory_space<vmem>>, vector<1x256xf32>
    %13 = vector.broadcast %12 : vector<1x256xf32> to vector<16x256xf32>
    %14 = arith.addf %11, %13 : vector<16x256xf32>
    %c0_8 = arith.constant 0 : index
    %c0_9 = arith.constant 0 : index
    %15 = vector.load %arg3[%c0_8, %c0_9] : memref<16x32xbf16, #tpu.memory_space<vmem>>, vector<16x32xbf16>
    %c0_10 = arith.constant 0 : index
    %c0_11 = arith.constant 0 : index
    %16 = vector.load %arg6[%c0_10, %c0_11] : memref<32x256xbf16, #tpu.memory_space<vmem>>, vector<32x256xbf16>
    %cst_12 = arith.constant dense<0.000000e+00> : vector<16x256xf32>
    %17 = tpu.matmul %15, %16, %cst_12 {dimension_numbers = #tpu.dot_dimension_numbers<[1], [0], [0], [1], [0, 0, 1, 1], [], []>} : vector<16x32xbf16>, vector<32x256xbf16>, vector<16x256xf32> -> vector<16x256xf32>
    %c0_13 = arith.constant 0 : index
    %c0_14 = arith.constant 0 : index
    %18 = vector.load %arg9[%c0_13, %c0_14] : memref<1x256xf32, #tpu.memory_space<vmem>>, vector<1x256xf32>
    %19 = vector.broadcast %18 : vector<1x256xf32> to vector<16x256xf32>
    %20 = arith.addf %17, %19 : vector<16x256xf32>
    %c0_15 = arith.constant 0 : index
    %c0_16 = arith.constant 0 : index
    %21 = vector.load %arg4[%c0_15, %c0_16] : memref<16x32xbf16, #tpu.memory_space<vmem>>, vector<16x32xbf16>
    %c0_17 = arith.constant 0 : index
    %c0_18 = arith.constant 0 : index
    %22 = vector.load %arg7[%c0_17, %c0_18] : memref<32x256xbf16, #tpu.memory_space<vmem>>, vector<32x256xbf16>
    %cst_19 = arith.constant dense<0.000000e+00> : vector<16x256xf32>
    %23 = tpu.matmul %21, %22, %cst_19 {dimension_numbers = #tpu.dot_dimension_numbers<[1], [0], [0], [1], [0, 0, 1, 1], [], []>} : vector<16x32xbf16>, vector<32x256xbf16>, vector<16x256xf32> -> vector<16x256xf32>
    %c0_20 = arith.constant 0 : index
    %c0_21 = arith.constant 0 : index
    %24 = vector.load %arg10[%c0_20, %c0_21] : memref<1x256xf32, #tpu.memory_space<vmem>>, vector<1x256xf32>
    %25 = vector.broadcast %24 : vector<1x256xf32> to vector<16x256xf32>
    %26 = arith.addf %23, %25 : vector<16x256xf32>
    %cst_22 = arith.constant dense<0xFF800000> : vector<16xf32>
    %27 = vector.multi_reduction <maximumf>, %14, %cst_22 [1] : vector<16x256xf32> to vector<16xf32>
    %28 = vector.shape_cast %27 : vector<16xf32> to vector<16x1xf32>
    %29 = vector.broadcast %28 : vector<16x1xf32> to vector<16x256xf32>
    %30 = arith.subf %14, %29 : vector<16x256xf32>
    %31 = math.exp %30 : vector<16x256xf32>
    %cst_23 = arith.constant dense<0.000000e+00> : vector<16xf32>
    %32 = vector.multi_reduction <add>, %31, %cst_23 [1] : vector<16x256xf32> to vector<16xf32>
    %33 = vector.shape_cast %32 : vector<16xf32> to vector<16x1xf32>
    %34 = math.log %33 : vector<16x1xf32>
    %35 = arith.addf %28, %34 : vector<16x1xf32>
    %36 = tpu.reciprocal %33 {approx = true} : vector<16x1xf32> -> vector<16x1xf32>
    %cst_24 = arith.constant dense<0xFF800000> : vector<16xf32>
    %37 = vector.multi_reduction <maximumf>, %20, %cst_24 [1] : vector<16x256xf32> to vector<16xf32>
    %38 = vector.shape_cast %37 : vector<16xf32> to vector<16x1xf32>
    %39 = vector.broadcast %38 : vector<16x1xf32> to vector<16x256xf32>
    %40 = arith.subf %20, %39 : vector<16x256xf32>
    %41 = math.exp %40 : vector<16x256xf32>
    %cst_25 = arith.constant dense<0.000000e+00> : vector<16xf32>
    %42 = vector.multi_reduction <add>, %41, %cst_25 [1] : vector<16x256xf32> to vector<16xf32>
    %43 = vector.shape_cast %42 : vector<16xf32> to vector<16x1xf32>
    %44 = math.log %43 : vector<16x1xf32>
    %45 = arith.addf %38, %44 : vector<16x1xf32>
    %46 = tpu.reciprocal %43 {approx = true} : vector<16x1xf32> -> vector<16x1xf32>
    %cst_26 = arith.constant dense<0xFF800000> : vector<16xf32>
    %47 = vector.multi_reduction <maximumf>, %26, %cst_26 [1] : vector<16x256xf32> to vector<16xf32>
    %48 = vector.shape_cast %47 : vector<16xf32> to vector<16x1xf32>
    %49 = vector.broadcast %48 : vector<16x1xf32> to vector<16x256xf32>
    %50 = arith.subf %26, %49 : vector<16x256xf32>
    %51 = math.exp %50 : vector<16x256xf32>
    %cst_27 = arith.constant dense<0.000000e+00> : vector<16xf32>
    %52 = vector.multi_reduction <add>, %51, %cst_27 [1] : vector<16x256xf32> to vector<16xf32>
    %53 = vector.shape_cast %52 : vector<16xf32> to vector<16x1xf32>
    %54 = math.log %53 : vector<16x1xf32>
    %55 = arith.addf %48, %54 : vector<16x1xf32>
    %56 = tpu.reciprocal %53 {approx = true} : vector<16x1xf32> -> vector<16x1xf32>
    %57 = arith.subf %20, %14 : vector<16x256xf32>
    %58 = arith.subf %45, %35 : vector<16x1xf32>
    %59 = vector.broadcast %58 : vector<16x1xf32> to vector<16x256xf32>
    %60 = arith.subf %57, %59 : vector<16x256xf32>
    %61 = arith.subf %26, %14 : vector<16x256xf32>
    %62 = arith.subf %55, %35 : vector<16x1xf32>
    %63 = vector.broadcast %62 : vector<16x1xf32> to vector<16x256xf32>
    %64 = arith.subf %61, %63 : vector<16x256xf32>
    %65 = arith.mulf %41, %60 : vector<16x256xf32>
    %cst_28 = arith.constant dense<0.000000e+00> : vector<16xf32>
    %66 = vector.multi_reduction <add>, %65, %cst_28 [1] : vector<16x256xf32> to vector<16xf32>
    %67 = vector.shape_cast %66 : vector<16xf32> to vector<16x1xf32>
    %68 = arith.mulf %46, %67 : vector<16x1xf32>
    %cst_29 = arith.constant 0.000000e+00 : f32
    %69 = vector.broadcast %cst_29 : f32 to vector<16x1xf32>
    %70 = arith.subf %69, %36 : vector<16x1xf32>
    %71 = arith.mulf %31, %60 : vector<16x256xf32>
    %cst_30 = arith.constant dense<0.000000e+00> : vector<16xf32>
    %72 = vector.multi_reduction <add>, %71, %cst_30 [1] : vector<16x256xf32> to vector<16xf32>
    %73 = vector.shape_cast %72 : vector<16xf32> to vector<16x1xf32>
    %74 = arith.mulf %70, %73 : vector<16x1xf32>
    %75 = arith.mulf %51, %64 : vector<16x256xf32>
    %cst_31 = arith.constant dense<0.000000e+00> : vector<16xf32>
    %76 = vector.multi_reduction <add>, %75, %cst_31 [1] : vector<16x256xf32> to vector<16xf32>
    %77 = vector.shape_cast %76 : vector<16xf32> to vector<16x1xf32>
    %78 = arith.mulf %56, %77 : vector<16x1xf32>
    %cst_32 = arith.constant 0.000000e+00 : f32
    %79 = vector.broadcast %cst_32 : f32 to vector<16x1xf32>
    %80 = arith.subf %79, %36 : vector<16x1xf32>
    %81 = arith.mulf %31, %64 : vector<16x256xf32>
    %cst_33 = arith.constant dense<0.000000e+00> : vector<16xf32>
    %82 = vector.multi_reduction <add>, %81, %cst_33 [1] : vector<16x256xf32> to vector<16xf32>
    %83 = vector.shape_cast %82 : vector<16xf32> to vector<16x1xf32>
    %84 = arith.mulf %80, %83 : vector<16x1xf32>
    %85 = tpu.iota {dimensions = array<i32: 1>} : vector<16x256xi32>
    %86 = vector.broadcast %8 : vector<16x1xi32> to vector<16x256xi32>
    %87 = arith.cmpi eq, %85, %86 : vector<16x256xi32>
    %88 = arith.extui %87 : vector<16x256xi1> to vector<16x256xi32>
    %89 = arith.sitofp %88 : vector<16x256xi32> to vector<16x256xf32>
    %90 = arith.mulf %89, %14 : vector<16x256xf32>
    %cst_34 = arith.constant dense<0.000000e+00> : vector<16xf32>
    %91 = vector.multi_reduction <add>, %90, %cst_34 [1] : vector<16x256xf32> to vector<16xf32>
    %92 = vector.shape_cast %91 : vector<16xf32> to vector<16x1xf32>
    %93 = arith.subf %35, %92 : vector<16x1xf32>
    %94 = arith.mulf %93, %4 : vector<16x1xf32>
    %95 = vector.shape_cast %94 : vector<16x1xf32> to vector<1x16x1xf32>
    %cst_35 = arith.constant dense<0.000000e+00> : vector<1xf32>
    %96 = vector.multi_reduction <add>, %95, %cst_35 [1, 2] : vector<1x16x1xf32> to vector<1xf32>
    %97 = vector.shape_cast %96 : vector<1xf32> to vector<1x1x1xf32>
    %98 = vector.extract %97[0, 0, 0] : f32 from vector<1x1x1xf32>
    %99 = arith.mulf %68, %4 : vector<16x1xf32>
    %100 = vector.shape_cast %99 : vector<16x1xf32> to vector<1x16x1xf32>
    %cst_36 = arith.constant dense<0.000000e+00> : vector<1xf32>
    %101 = vector.multi_reduction <add>, %100, %cst_36 [1, 2] : vector<1x16x1xf32> to vector<1xf32>
    %102 = vector.shape_cast %101 : vector<1xf32> to vector<1x1x1xf32>
    %103 = vector.extract %102[0, 0, 0] : f32 from vector<1x1x1xf32>
    %104 = arith.mulf %74, %4 : vector<16x1xf32>
    %105 = vector.shape_cast %104 : vector<16x1xf32> to vector<1x16x1xf32>
    %cst_37 = arith.constant dense<0.000000e+00> : vector<1xf32>
    %106 = vector.multi_reduction <add>, %105, %cst_37 [1, 2] : vector<1x16x1xf32> to vector<1xf32>
    %107 = vector.shape_cast %106 : vector<1xf32> to vector<1x1x1xf32>
    %108 = vector.extract %107[0, 0, 0] : f32 from vector<1x1x1xf32>
    %109 = arith.mulf %78, %4 : vector<16x1xf32>
    %110 = vector.shape_cast %109 : vector<16x1xf32> to vector<1x16x1xf32>
    %cst_38 = arith.constant dense<0.000000e+00> : vector<1xf32>
    %111 = vector.multi_reduction <add>, %110, %cst_38 [1, 2] : vector<1x16x1xf32> to vector<1xf32>
    %112 = vector.shape_cast %111 : vector<1xf32> to vector<1x1x1xf32>
    %113 = vector.extract %112[0, 0, 0] : f32 from vector<1x1x1xf32>
    %114 = arith.mulf %84, %4 : vector<16x1xf32>
    %115 = vector.shape_cast %114 : vector<16x1xf32> to vector<1x16x1xf32>
    %cst_39 = arith.constant dense<0.000000e+00> : vector<1xf32>
    %116 = vector.multi_reduction <add>, %115, %cst_39 [1, 2] : vector<1x16x1xf32> to vector<1xf32>
    %117 = vector.shape_cast %116 : vector<1xf32> to vector<1x1x1xf32>
    %118 = vector.extract %117[0, 0, 0] : f32 from vector<1x1x1xf32>
    %119 = vector.shape_cast %4 : vector<16x1xf32> to vector<1x16x1xf32>
    %cst_40 = arith.constant dense<0.000000e+00> : vector<1xf32>
    %120 = vector.multi_reduction <add>, %119, %cst_40 [1, 2] : vector<1x16x1xf32> to vector<1xf32>
    %121 = vector.shape_cast %120 : vector<1xf32> to vector<1x1x1xf32>
    %122 = vector.extract %121[0, 0, 0] : f32 from vector<1x1x1xf32>
    %123 = tpu.iota {dimensions = array<i32: 1>} : vector<8x128xi32>
    %c0_i32_41 = arith.constant 0 : i32
    %124 = vector.broadcast %c0_i32_41 : i32 to vector<8x128xi32>
    %125 = arith.cmpi eq, %123, %124 : vector<8x128xi32>
    %cst_42 = arith.constant 0.000000e+00 : f32
    %126 = vector.broadcast %98 : f32 to vector<8x128xf32>
    %127 = vector.broadcast %cst_42 : f32 to vector<8x128xf32>
    %128 = arith.select %125, %126, %127 : vector<8x128xi1>, vector<8x128xf32>
    %c1_i32 = arith.constant 1 : i32
    %129 = vector.broadcast %c1_i32 : i32 to vector<8x128xi32>
    %130 = arith.cmpi eq, %123, %129 : vector<8x128xi32>
    %cst_43 = arith.constant 0.000000e+00 : f32
    %131 = vector.broadcast %103 : f32 to vector<8x128xf32>
    %132 = vector.broadcast %cst_43 : f32 to vector<8x128xf32>
    %133 = arith.select %130, %131, %132 : vector<8x128xi1>, vector<8x128xf32>
    %134 = arith.addf %128, %133 : vector<8x128xf32>
    %c2_i32 = arith.constant 2 : i32
    %135 = vector.broadcast %c2_i32 : i32 to vector<8x128xi32>
    %136 = arith.cmpi eq, %123, %135 : vector<8x128xi32>
    %cst_44 = arith.constant 0.000000e+00 : f32
    %137 = vector.broadcast %108 : f32 to vector<8x128xf32>
    %138 = vector.broadcast %cst_44 : f32 to vector<8x128xf32>
    %139 = arith.select %136, %137, %138 : vector<8x128xi1>, vector<8x128xf32>
    %140 = arith.addf %134, %139 : vector<8x128xf32>
    %c3_i32 = arith.constant 3 : i32
    %141 = vector.broadcast %c3_i32 : i32 to vector<8x128xi32>
    %142 = arith.cmpi eq, %123, %141 : vector<8x128xi32>
    %cst_45 = arith.constant 0.000000e+00 : f32
    %143 = vector.broadcast %113 : f32 to vector<8x128xf32>
    %144 = vector.broadcast %cst_45 : f32 to vector<8x128xf32>
    %145 = arith.select %142, %143, %144 : vector<8x128xi1>, vector<8x128xf32>
    %146 = arith.addf %140, %145 : vector<8x128xf32>
    %c4_i32 = arith.constant 4 : i32
    %147 = vector.broadcast %c4_i32 : i32 to vector<8x128xi32>
    %148 = arith.cmpi eq, %123, %147 : vector<8x128xi32>
    %cst_46 = arith.constant 0.000000e+00 : f32
    %149 = vector.broadcast %118 : f32 to vector<8x128xf32>
    %150 = vector.broadcast %cst_46 : f32 to vector<8x128xf32>
    %151 = arith.select %148, %149, %150 : vector<8x128xi1>, vector<8x128xf32>
    %152 = arith.addf %146, %151 : vector<8x128xf32>
    %c5_i32 = arith.constant 5 : i32
    %153 = vector.broadcast %c5_i32 : i32 to vector<8x128xi32>
    %154 = arith.cmpi eq, %123, %153 : vector<8x128xi32>
    %cst_47 = arith.constant 0.000000e+00 : f32
    %155 = vector.broadcast %122 : f32 to vector<8x128xf32>
    %156 = vector.broadcast %cst_47 : f32 to vector<8x128xf32>
    %157 = arith.select %154, %155, %156 : vector<8x128xi1>, vector<8x128xf32>
    %158 = arith.addf %152, %157 : vector<8x128xf32>
    %c0_48 = arith.constant 0 : index
    %c0_49 = arith.constant 0 : index
    %159 = vector.load %arg11[%c0_48, %c0_49] : memref<8x128xf32, #tpu.memory_space<vmem>>, vector<8x128xf32>
    tpu.vector_store %arg11[%c0_48, %c0_49], %158 {strides = array<i32>} : memref<8x128xf32, #tpu.memory_space<vmem>>, vector<8x128xf32>,
    return
  }
  func.func @transform_0(%arg0: i32) -> (i32, i32) {
    %c0_i32 = arith.constant 0 : i32
    %c0_i32_0 = arith.constant 0 : i32
    return %arg0, %c0_i32 : i32, i32
  }
  func.func @transform_1(%arg0: i32) -> (i32, i32) {
    %c0_i32 = arith.constant 0 : i32
    %c0_i32_0 = arith.constant 0 : i32
    return %arg0, %c0_i32 : i32, i32
  }
  func.func @transform_2(%arg0: i32) -> (i32, i32) {
    %c0_i32 = arith.constant 0 : i32
    %c0_i32_0 = arith.constant 0 : i32
    return %arg0, %c0_i32 : i32, i32
  }
  func.func @transform_3(%arg0: i32) -> (i32, i32) {
    %c0_i32 = arith.constant 0 : i32
    %c0_i32_0 = arith.constant 0 : i32
    return %arg0, %c0_i32 : i32, i32
  }
  func.func @transform_4(%arg0: i32) -> (i32, i32) {
    %c0_i32 = arith.constant 0 : i32
    %c0_i32_0 = arith.constant 0 : i32
    %c0_i32_1 = arith.constant 0 : i32
    return %c0_i32, %c0_i32_0 : i32, i32
  }
  func.func @transform_5(%arg0: i32) -> (i32, i32) {
    %c0_i32 = arith.constant 0 : i32
    %c0_i32_0 = arith.constant 0 : i32
    %c0_i32_1 = arith.constant 0 : i32
    return %c0_i32, %c0_i32_0 : i32, i32
  }
  func.func @transform_6(%arg0: i32) -> (i32, i32) {
    %c0_i32 = arith.constant 0 : i32
    %c0_i32_0 = arith.constant 0 : i32
    %c0_i32_1 = arith.constant 0 : i32
    return %c0_i32, %c0_i32_0 : i32, i32
  }
  func.func @transform_7(%arg0: i32) -> (i32, i32) {
    %c0_i32 = arith.constant 0 : i32
    %c0_i32_0 = arith.constant 0 : i32
    %c0_i32_1 = arith.constant 0 : i32
    return %c0_i32, %c0_i32_0 : i32, i32
  }
  func.func @transform_8(%arg0: i32) -> (i32, i32) {
    %c0_i32 = arith.constant 0 : i32
    %c0_i32_0 = arith.constant 0 : i32
    %c0_i32_1 = arith.constant 0 : i32
    return %c0_i32, %c0_i32_0 : i32, i32
  }
  func.func @transform_9(%arg0: i32) -> (i32, i32) {
    %c0_i32 = arith.constant 0 : i32
    %c0_i32_0 = arith.constant 0 : i32
    %c0_i32_1 = arith.constant 0 : i32
    return %c0_i32, %c0_i32_0 : i32, i32
  }
  func.func @transform_10(%arg0: i32) -> (i32, i32) {
    %c0_i32 = arith.constant 0 : i32
    %c0_i32_0 = arith.constant 0 : i32
    return %arg0, %c0_i32 : i32, i32
  }
}

</mosaic_0001>

<bundles_post_ra>
// kernel: tpu_custom_call.1
= control target key start
LH: loop header
LB: loop body
LE: loop exit
PB: predicated region body
PF: predicated region fallthrough
CT: control target
= control target key end

     0   :  { %15 = vsyncpa [#allocation3], 0  ;;  %s1398_s0 = inlined_call_operand.vmem [shape: s32[16,1], index: 0, kind: input, shape index: {}]   ;;  %s1399_s1 = inlined_call_operand.hbm [shape: bf16[16,32], index: 1, kind: input, shape index: {}]   ;;  %s1400_s2 = inlined_call_operand.hbm [shape: bf16[16,32], index: 2, kind: input, shape index: {}]   ;;  %s1401_s3 = inlined_call_operand.hbm [shape: bf16[16,32], index: 3, kind: input, shape index: {}]   ;;  %s1402_s4 = inlined_call_operand.vmem [shape: bf16[32,256], index: 4, kind: input, shape index: {}]   ;;  %s1403_s5 = inlined_call_operand.hbm [shape: bf16[32,256], index: 5, kind: input, shape index: {}]   ;;  %s1404_s6 = inlined_call_operand.hbm [shape: bf16[32,256], index: 6, kind: input, shape index: {}]   ;;  %s1405_s7 = inlined_call_operand.vmem [shape: f32[1,256], index: 7, kind: input, shape index: {}]   ;;  %s1406_s8 = inlined_call_operand.vmem [shape: f32[1,256], index: 8, kind: input, shape index: {}]   ;;  %s1407_s9 = inlined_call_operand.vmem [shape: f32[1,256], index: 9, kind: input, shape index: {}]   ;;  %s1408_s10 = inlined_call_operand.hbm [shape: f32[8,128], index: 10, kind: output, shape index: {}]  }
   0x1   :  { %16 = vsyncpa [#allocation6], 0 }
   0x2   :  { %17 = vsyncpa [#allocation9], 0 }
   0x3   :  { %18 = vsyncpa [#allocation4], 0  ;;  %s967_s13 = smov [#allocation5]   ;;  %s968_s15 = smov [#allocation8]  }
   0x4   :  { %s38_s14 = sshll.u32 %s967_s13, 4  ;;  %s64_s16 = sshll.u32 %s968_s15, 4  ;;  %s39_s14 = int_to_ptr.vmem [resolvable:$true] %s38_s14  ;;  %s1034_s16 = int_to_ptr.vmem [resolvable:$true] %s64_s16 }
   0x5   :  { %s827_s19 = scalar_lea.hbm %s1400_s2, 128 }
   0x6   :  { %p828_p0 = scmp.ne.s32.totalorder %s1400_s2, %s827_s19  ;;  %p831_p1 = scmp.lt.u32.totalorder %s827_s19, %s1400_s2 }
   0x8   :  { %p833_p2 = pnand %p831_p1, %p828_p0 }
   0xa   :  { %836 = shalt.err (!%p833_p2)
}
   0xb   :  { %s837_s24 = scalar_lea.vmem %s39_s14, 128  ;;  %p842_p4 = scmp.lt.s32.totalorder %s39_s14, %s39_s14 }
   0xc   :  { %p838_p3 = scmp.ne.s32.totalorder %s39_s14, %s837_s24  ;;  %p843_p5 = scmp.lt.s32.totalorder %s837_s24, %s837_s24 }
   0xe   :  { %p844_p6 = por %p843_p5, %p842_p4 }
  0x10   :  { %p845_p7 = pnand %p844_p6, %p838_p3 }
  0x12   :  { %848 = shalt.err (!%p845_p7)
}
  0x13   :  { %s969_s25 = smov 64   ;;  %s970_s26 = smov 4  }
  0x14   :  { %44 = dma.hbm_to_vmem [thread:$0]  %s1400_s2, 128, %s39_s14, [#allocation6], %s969_s25, %s969_s25, %s970_s26  }
  0x15   :  { %s849_s11 = scalar_lea.hbm %s1403_s5, 512 }
  0x16   :  { %p850_p8 = scmp.ne.s32.totalorder %s1403_s5, %s849_s11  ;;  %p853_p9 = scmp.lt.u32.totalorder %s849_s11, %s1403_s5 }
  0x18   :  { %p855_p10 = pnand %p853_p9, %p850_p8 }
  0x1a   :  { %858 = shalt.err (!%p855_p10)
}
  0x1b   :  { %s859_s18 = scalar_lea.vmem %s1034_s16, 512  ;;  %p864_p12 = scmp.lt.s32.totalorder %s1034_s16, %s1034_s16 }
  0x1c   :  { %p860_p11 = scmp.ne.s32.totalorder %s1034_s16, %s859_s18  ;;  %p865_p13 = scmp.lt.s32.totalorder %s859_s18, %s859_s18 }
  0x1e   :  { %p866_p0 = por %p865_p13, %p864_p12 }
  0x20   :  { %p867_p1 = pnand %p866_p0, %p860_p11 }
  0x22   :  { %870 = shalt.err (!%p867_p1)
}
  0x23   :  { %s971_s2 = smov 128   ;;  %s972_s14 = smov 8  }
  0x24   :  { %70 = dma.hbm_to_vmem [thread:$0]  %s1403_s5, 512, %s1034_s16, [#allocation9], %s971_s2, %s971_s2, %s972_s14  }
  0x25   :  { %s973_s21 = smov [#allocation2]   ;;  %s974_s23 = smov [#allocation7]  }
  0x26   :  { %s26_s22 = sshll.u32 %s973_s21, 4  ;;  %s50_s24 = sshll.u32 %s974_s23, 4  ;;  %s27_s22 = int_to_ptr.vmem [resolvable:$true] %s26_s22  ;;  %s1071_s24 = int_to_ptr.vmem [resolvable:$true] %s50_s24 }
  0x27   :  { %s871_s29 = scalar_lea.hbm %s1399_s1, 128 }
  0x28   :  { %p872_p2 = scmp.ne.s32.totalorder %s1399_s1, %s871_s29  ;;  %p875_p3 = scmp.lt.u32.totalorder %s871_s29, %s1399_s1 }
  0x2a   :  { %p877_p4 = pnand %p875_p3, %p872_p2 }
  0x2c   :  { %880 = shalt.err (!%p877_p4)
}
  0x2d   :  { %s881_s5 = scalar_lea.vmem %s27_s22, 128  ;;  %p886_p6 = scmp.lt.s32.totalorder %s27_s22, %s27_s22 }
  0x2e   :  { %p882_p5 = scmp.ne.s32.totalorder %s27_s22, %s881_s5  ;;  %p887_p7 = scmp.lt.s32.totalorder %s881_s5, %s881_s5 }
  0x30   :  { %p888_p8 = por %p887_p7, %p886_p6 }
  0x32   :  { %p889_p9 = pnand %p888_p8, %p882_p5 }
  0x34   :  { %892 = shalt.err (!%p889_p9)
}
  0x35   :  { %32 = dma.hbm_to_vmem [thread:$0]  %s1399_s1, 128, %s27_s22, [#allocation3], %s969_s25, %s969_s25, %s970_s26  }
  0x36   :  { %s893_s19 = scalar_lea.hbm %s1401_s3, 128 }
  0x37   :  { %p894_p10 = scmp.ne.s32.totalorder %s1401_s3, %s893_s19  ;;  %p897_p11 = scmp.lt.u32.totalorder %s893_s19, %s1401_s3 }
  0x39   :  { %p899_p12 = pnand %p897_p11, %p894_p10 }
  0x3b   :  { %902 = shalt.err (!%p899_p12)
}
  0x3c   :  { %s903_s28 = scalar_lea.vmem %s1071_s24, 128  ;;  %p908_p0 = scmp.lt.s32.totalorder %s1071_s24, %s1071_s24 }
  0x3d   :  { %p904_p13 = scmp.ne.s32.totalorder %s1071_s24, %s903_s28  ;;  %p909_p1 = scmp.lt.s32.totalorder %s903_s28, %s903_s28 }
  0x3f   :  { %p910_p2 = por %p909_p1, %p908_p0 }
  0x41   :  { %p911_p3 = pnand %p910_p2, %p904_p13 }
  0x43   :  { %914 = shalt.err (!%p911_p3)
}
  0x44   :  { %56 = dma.hbm_to_vmem [thread:$0]  %s1401_s3, 128, %s1071_s24, [#allocation6], %s969_s25, %s969_s25, %s970_s26  }
  0x45   :  { %s975_s29 = smov [#allocation10]   ;;  %s915_s13 = scalar_lea.hbm %s1404_s6, 512 }
  0x46   :  { %s76_s30 = sshll.u32 %s975_s29, 4  ;;  %p916_p4 = scmp.ne.s32.totalorder %s1404_s6, %s915_s13  ;;  %s77_s30 = int_to_ptr.vmem [resolvable:$true] %s76_s30 }
  0x47   :  { %p919_p5 = scmp.lt.u32.totalorder %s915_s13, %s1404_s6 }
  0x49   :  { %p921_p6 = pnand %p919_p5, %p916_p4 }
  0x4b   :  { %924 = shalt.err (!%p921_p6)
}
  0x4c   :  { %s925_s18 = scalar_lea.vmem %s77_s30, 512  ;;  %p930_p8 = scmp.lt.s32.totalorder %s77_s30, %s77_s30 }
  0x4d   :  { %p926_p7 = scmp.ne.s32.totalorder %s77_s30, %s925_s18  ;;  %p931_p9 = scmp.lt.s32.totalorder %s925_s18, %s925_s18 }
  0x4f   :  { %p932_p10 = por %p931_p9, %p930_p8 }
  0x51   :  { %p933_p11 = pnand %p932_p10, %p926_p7 }
  0x53   :  { %936 = shalt.err (!%p933_p11)
}
  0x54   :  { %82 = dma.hbm_to_vmem [thread:$0]  %s1404_s6, 512, %s77_s30, [#allocation9], %s971_s2, %s971_s2, %s972_s14  }
  0x55   :  { %959 = dma.done.wait [#allocation3], 128  }
  0x56   :  { %960 = vsyncadd [#allocation3], 4294967168 }
  0x57   :  { %961 = dma.done.wait [#allocation6], 256  }
  0x58   :  { %962 = vsyncadd [#allocation6], 4294967040 }
  0x59   :  { %963 = dma.done.wait [#allocation9], 1024  }
  0x5a   :  { %964 = vsyncadd [#allocation9], 4294966272  ;;  %v976_v0 = vmov 0   ;;  %v758_v1 = vld [vmem:[%s1402_s4 + $0x4] ss:$8 sps:$4 sm:$0xff]   ;;  %v771_v10 = vld [vmem:[#allocation5] sm:$0xff]   ;;  %v125_v16 = vlaneseq }
  0x5b   :  { %196 = vmatprep.mubr.bf16.mxu0 %v976_v0  ;;  %285 = vmatprep.mubr.bf16.mxu1 %v976_v0  ;;  %v760_v2 = vld [vmem:[#allocation8 + $0x4] ss:$8 sps:$4 sm:$0xff]   ;;  %v762_v3 = vld [vmem:[%s1402_s4] ss:$8 sps:$4 sm:$0xff]   ;;  %v764_v5 = vld [vmem:[%s1402_s4 + $0x14] ss:$8 sps:$4 sm:$0xff]  }
  0x5c   :  { %757 = vset.pattern.permute.xlu1 %v976_v0  ;;  %756 = vset.pattern.permute.xlu0 %v976_v0  ;;  %v763_v4 = vld [vmem:[#allocation8] ss:$8 sps:$4 sm:$0xff]   ;;  %v766_v6 = vld [vmem:[#allocation8 + $0x14] ss:$8 sps:$4 sm:$0xff]   ;;  %v768_v7 = vld [vmem:[%s1402_s4 + $0x10] ss:$8 sps:$4 sm:$0xff]  }
  0x5d   :  { %164 = vmatprep.subr.bf16.mxu0 %v758_v1  ;;  %253 = vmatprep.subr.bf16.mxu1 %v760_v2  ;;  %v769_v8 = vld [vmem:[#allocation8 + $0x10] ss:$8 sps:$4 sm:$0xff]   ;;  %v770_v9 = vld [vmem:[#allocation2] sm:$0xff]   ;;  %vm160_vm0 = vcmask 261120   ;;  %v777_v13 = vld [vmem:[#allocation10 + $0x14] ss:$8 sps:$4 sm:$0xff]  }
  0x5e   :  { %165 = vmatpush1.bf16.msra.mxu0 %v762_v3  ;;  %254 = vmatpush1.bf16.msra.mxu1 %v763_v4  ;;  %v772_v11 = vld [vmem:[#allocation10] ss:$8 sps:$4 sm:$0xff]   ;;  %v774_v12 = vld [vmem:[#allocation10 + $0x4] ss:$8 sps:$4 sm:$0xff]   ;;  %v775_v14 = vld [vmem:[#allocation10 + $0x10] ss:$8 sps:$4 sm:$0xff]  }
  0x5f   :  { %166 = vmatprep.subr.bf16.mxu0 %v764_v5  ;;  %255 = vmatprep.subr.bf16.mxu1 %v766_v6  ;;  %v778_v15 = vld [vmem:[#allocation7] sm:$0xff]   ;;  %v126_v17 = vshrl.u32 %v125_v16, 7  ;;  %v123_v19 = vld [vmem:[%s1405_s7] sm:$0x3]  ;;  %vm586_vm9 = vcmask 7168   ;;  %s978_s16 = smov [#allocation11]  }
  0x60   :  { %v213_v20 = vld [vmem:[%s1406_s8] sm:$0x3]  ;;  %s697_s15 = sshll.u32 %s978_s16, 4  ;;  %s698_s15 = int_to_ptr.vmem [resolvable:$true] %s697_s15 }
  0x61   :  { %v127_v18 = vsub.s32 0, %v126_v17  ;;  %v131_v21 = vsub.s32 1, %v126_v17  ;;  %v302_v36 = vld [vmem:[%s1407_s9] sm:$0x3]  ;;  %s937_s17 = scalar_lea.vmem %s698_s15, 128  ;;  %p942_p13 = scmp.lt.s32.totalorder %s698_s15, %s698_s15 }
  0x62   :  { %167 = vmatpush1.bf16.msra.mxu0 %v768_v7  ;;  %256 = vmatpush1.bf16.msra.mxu1 %v769_v8  ;;  %p938_p12 = scmp.ne.s32.totalorder %s698_s15, %s937_s17  ;;  %p943_p0 = scmp.lt.s32.totalorder %s937_s17, %s937_s17 }
  0x63   :  { %342 = vmatprep.subr.bf16.mxu0 %v774_v12  ;;  %v128_v22 = vrot.slane %v123_v19, %v127_v18  ;;  %v218_v23 = vrot.slane %v213_v20, %v127_v18  ;;  %v132_v24 = vrot.slane %v123_v19, %v131_v21  ;;  %v222_v25 = vrot.slane %v213_v20, %v131_v21 }
  0x64   :  { %v307_v45 = vrot.slane %v302_v36, %v127_v18  ;;  %v311_v46 = vrot.slane %v302_v36, %v131_v21  ;;  %p944_p1 = por %p943_p0, %p942_p13 }
  0x65   :  { %715 = vmatmul.mubr.msk.bf16.vlgmr.msra.gmra.mrb[0].mxu0 %vm160_vm0, %v770_v9  ;;  %721 = vmatmul.mubr.msk.bf16.vlgmr.msra.gmra.mrb[0].mxu1 %vm160_vm0, %v771_v10 }
  0x66   :  { %343 = vmatpush1.bf16.msra.mxu0 %v772_v11  ;;  %374 = vmatprep.mubr.bf16.mxu0 %v976_v0  ;;  %p945_p2 = pnand %p944_p1, %p938_p12 }
  0x67   :  { %344 = vmatprep.subr.bf16.mxu0 %v777_v13 }
  0x6a   :  { %345 = vmatpush1.bf16.msra.mxu0 %v775_v14 }
  0x6d   :  { %727 = vmatmul.mubr.msk.bf16.vlgmr.msra.gmra.mrb[4].mxu0 %vm160_vm0, %v778_v15 }
 0x138   :  { %v198_v26 = vpop.f32.mrb[0].mxu0  ;;  %v287_v27 = vpop.f32.mrb[0].mxu1 }
 0x139   :  { %v1142_v28 = vadd.f32 %v198_v26, %v128_v22  ;;  %v1144_v29 = vadd.f32 %v287_v27, %v218_v23  ;;  %v200_v30 = vpop.f32.mrb[1].mxu0  ;;  %v289_v31 = vpop.f32.mrb[1].mxu1 }
 0x13a   :  { %v1146_v32 = vadd.f32 %v200_v30, %v132_v24  ;;  %v1148_v33 = vadd.f32 %v289_v31, %v222_v25  ;;  %v202_v34 = vpop.f32.mrb[2].mxu0  ;;  %v291_v35 = vpop.f32.mrb[2].mxu1 }
 0x13b   :  { %v204_v37 = vpop.f32.mrb[3].mxu0  ;;  %v293_v38 = vpop.f32.mrb[3].mxu1  ;;  %v1153_v39 = vadd.f32 %v291_v35, %v218_v23  ;;  %v1159_v42 = vadd.f32 %v202_v34, %v128_v22 }
 0x13c   :  { %v1155_v40 = vadd.f32 %v293_v38, %v222_v25  ;;  %v417_v41 = vmax.f32 %v1144_v29, %v1148_v33  ;;  %v1161_v43 = vadd.f32 %v204_v37, %v132_v24  ;;  %v385_v44 = vmax.f32 %v1142_v28, %v1146_v32 }
 0x13e   :  { %418 = vmax.xlane.f32.xlu1 %v417_v41  ;;  %v420_v47 = vmax.f32 %v1153_v39, %v1155_v40  ;;  %386 = vmax.xlane.f32.xlu0 %v385_v44  ;;  %v388_v51 = vmax.f32 %v1159_v42, %v1161_v43 }
 0x140   :  { %v376_v48 = vpop.f32.mrb[4].mxu0 }
 0x141   :  { %v1167_v49 = vadd.f32 %v376_v48, %v307_v45  ;;  %v378_v50 = vpop.f32.mrb[5].mxu0 }
 0x142   :  { %v1171_v52 = vadd.f32 %v378_v50, %v311_v46  ;;  %421 = vmax.xlane.f32.xlu1 %v420_v47  ;;  %v380_v53 = vpop.f32.mrb[6].mxu0  ;;  %389 = vmax.xlane.f32.xlu0 %v388_v51 }
 0x143   :  { %v1173_v54 = vadd.f32 %v380_v53, %v307_v45  ;;  %v382_v55 = vpop.f32.mrb[7].mxu0 }
 0x144   :  { %v1175_v56 = vadd.f32 %v382_v55, %v311_v46  ;;  %v449_v57 = vmax.f32 %v1167_v49, %v1171_v52  ;;  %v1256_v55 = vld [vmem:[%s1398_s0 + $0x8] sm:$0xff] }
 0x145   :  { %vm114_vm1 = vcmp.eq.s32.totalorder %v1256_v55, 4294967196  ;;  %vm108_vm7 = vcmp.ne.s32.totalorder %v1256_v55, 4294967196 }
 0x146   :  { %v452_v58 = vmax.f32 %v1173_v54, %v1175_v56  ;;  %450 = vmax.xlane.f32.xlu0 %v449_v57  ;;  %v1261_v57 = vld [vmem:[%s1398_s0] sm:$0xff] }
 0x147   :  { %vm113_vm2 = vcmp.eq.s32.totalorder %v1261_v57, 4294967196  ;;  %vm107_vm8 = vcmp.ne.s32.totalorder %v1261_v57, 4294967196 }
 0x148   :  { %453 = vmax.xlane.f32.xlu1 %v452_v58  ;;  %v116_v58 = vsel %vm114_vm1, 0, %v1256_v55 }
 0x1cb   :  { %v1181_v59 = vpop.xlane.xlu1 %418  ;;  %v1187_v62 = vpop.xlane.xlu0 %386 }
 0x1cc   :  { %v423_v60 = vsub.f32 %v1144_v29, %v1181_v59  ;;  %v424_v61 = vsub.f32 %v1148_v33, %v1181_v59  ;;  %v391_v63 = vsub.f32 %v1142_v28, %v1187_v62  ;;  %v392_v0 = vsub.f32 %v1146_v32, %v1187_v62 }
 0x1ce   :  { %v427_v1 = vmul.f32 1.442695, %v423_v60  ;;  %v395_v2 = vmul.f32 1.442695, %v391_v63  ;;  %v397_v3 = vmul.f32 1.442695, %v392_v0 }
 0x1cf   :  { %v1193_v4 = vpop.xlane.xlu1 %421  ;;  %v429_v5 = vmul.f32 1.442695, %v424_v61  ;;  %v1199_v8 = vpop.xlane.xlu0 %389  ;;  %v115_v60 = vsel %vm113_vm2, 0, %v1261_v57 }
 0x1d0   :  { %v425_v6 = vsub.f32 %v1153_v39, %v1193_v4  ;;  %v426_v7 = vsub.f32 %v1155_v40, %v1193_v4  ;;  %779 = vpow2.f32 %v427_v1  ;;  %v393_v9 = vsub.f32 %v1159_v42, %v1199_v8 }
 0x1d1   :  { %v394_v10 = vsub.f32 %v1161_v43, %v1199_v8  ;;  %781 = vpow2.f32 %v395_v2 }
 0x1d2   :  { %v431_v11 = vmul.f32 1.442695, %v425_v6  ;;  %783 = vpow2.f32 %v397_v3  ;;  %v399_v12 = vmul.f32 1.442695, %v393_v9  ;;  %v433_v14 = vmul.f32 1.442695, %v426_v7 }
 0x1d3   :  { %v401_v13 = vmul.f32 1.442695, %v394_v10  ;;  %785 = vpow2.f32 %v429_v5  ;;  %v1205_v15 = vpop.xlane.xlu0 %450  ;;  %v1283_v5 = vand.u32 127, %v125_v16 }
 0x1d4   :  { %787 = vpow2.f32 %v431_v11  ;;  %v455_v17 = vsub.f32 %v1167_v49, %v1205_v15  ;;  %v456_v18 = vsub.f32 %v1171_v52, %v1205_v15 }
 0x1d5   :  { %v1211_v19 = vpop.xlane.xlu1 %453  ;;  %789 = vpow2.f32 %v399_v12  ;;  %v553_v12 = vadd.s32 128, %v1283_v5  ;;  %vm667_vm10 = vcmp.eq.s32.totalorder %v1283_v5, 0  ;;  %vm670_vm11 = vcmp.eq.s32.totalorder %v1283_v5, 1 }
 0x1d6   :  { %v457_v20 = vsub.f32 %v1173_v54, %v1211_v19  ;;  %v458_v21 = vsub.f32 %v1175_v56, %v1211_v19  ;;  %791 = vpow2.f32 %v401_v13  ;;  %v459_v22 = vmul.f32 1.442695, %v455_v17 }
 0x1d7   :  { %v461_v23 = vmul.f32 1.442695, %v456_v18  ;;  %793 = vpow2.f32 %v433_v14  ;;  %vm674_vm12 = vcmp.eq.s32.totalorder %v1283_v5, 2  ;;  %vm678_vm13 = vcmp.eq.s32.totalorder %v1283_v5, 3 }
 0x1d8   :  { %v463_v24 = vmul.f32 1.442695, %v457_v20  ;;  %795 = vpow2.f32 %v459_v22  ;;  %v465_v25 = vmul.f32 1.442695, %v458_v21  ;;  %v481_v22 = vsub.f32 %v1144_v29, %v1142_v28 }
 0x1d9   :  { %797 = vpow2.f32 %v461_v23  ;;  %v482_v23 = vsub.f32 %v1148_v33, %v1146_v32  ;;  %v491_v29 = vsub.f32 %v1167_v49, %v1142_v28  ;;  %vm682_vm14 = vcmp.eq.s32.totalorder %v1283_v5, 4 }
 0x1da   :  { %v1217_v26 = vpop.eup %779  ;;  %799 = vpow2.f32 %v463_v24  ;;  %vm686_vm15 = vcmp.eq.s32.totalorder %v1283_v5, 5 }
 0x1db   :  { %v1219_v27 = vpop.eup %781  ;;  %801 = vpow2.f32 %v465_v25 }
 0x1dc   :  { %v1221_v30 = vpop.eup %783 }
 0x1dd   :  { %v1223_v31 = vpop.eup %785  ;;  %v403_v34 = vadd.f32 %v1221_v30, %v1219_v27 }
 0x1de   :  { %v1227_v35 = vpop.eup %787  ;;  %v435_v41 = vadd.f32 %v1223_v31, %v1217_v26 }
 0x1df   :  { %v1229_v36 = vpop.eup %789  ;;  %404 = vadd.xlane.f32.xlu0 %v403_v34 }
 0x1e0   :  { %v1231_v37 = vpop.eup %791 }
 0x1e1   :  { %v1233_v38 = vpop.eup %793  ;;  %v406_v44 = vadd.f32 %v1231_v37, %v1229_v36 }
 0x1e2   :  { %v1239_v45 = vpop.eup %795  ;;  %v438_v50 = vadd.f32 %v1233_v38, %v1227_v35 }
 0x1e3   :  { %v1241_v46 = vpop.eup %797  ;;  %436 = vadd.xlane.f32.xlu0 %v435_v41  ;;  %407 = vadd.xlane.f32.xlu1 %v406_v44  ;;  %v484_v41 = vsub.f32 %v1155_v40, %v1161_v43 }
 0x1e4   :  { %v467_v47 = vadd.f32 %v1241_v46, %v1239_v45  ;;  %v1245_v48 = vpop.eup %799 }
 0x1e5   :  { %v1249_v51 = vpop.eup %801 }
 0x1e6   :  { %v470_v53 = vadd.f32 %v1249_v51, %v1245_v48 }
 0x1e7   :  { %439 = vadd.xlane.f32.xlu1 %v438_v50  ;;  %468 = vadd.xlane.f32.xlu0 %v467_v47 }
 0x1eb   :  { %471 = vadd.xlane.f32.xlu1 %v470_v53 }
 0x1fc   :  { %558 = vperm.xlu1 %757, %v116_v58   ;;  %v492_v58 = vsub.f32 %v1171_v52, %v1146_v32 }
 0x1fd   :  { %555 = vperm.xlu0 %756, %v115_v60  }
 0x26c   :  { %v1267_v61 = vpop.xlane.xlu0 %404 }
 0x26d   :  { %803 = vlog2.f32 %v1267_v61 }
 0x270   :  { %v1270_v63 = vpop.xlane.xlu1 %407  ;;  %v1272_v0 = vpop.xlane.xlu0 %436 }
 0x271   :  { %805 = vlog2.f32 %v1270_v63 }
 0x272   :  { %807 = vlog2.f32 %v1272_v0 }
 0x274   :  { %v1276_v1 = vpop.xlane.xlu1 %439  ;;  %v1278_v2 = vpop.xlane.xlu0 %468 }
 0x275   :  { %809 = vlog2.f32 %v1276_v1 }
 0x276   :  { %811 = vlog2.f32 %v1278_v2 }
 0x277   :  { %v804_v3 = vpop.eup %803 }
 0x278   :  { %v410_v7 = vmul.f32 0.6931472, %v804_v3  ;;  %v1285_v9 = vpop.xlane.xlu1 %471 }
 0x279   :  { %813 = vlog2.f32 %v1285_v9 }
 0x27a   :  { %v1290_v18 = vadd.f32 %v410_v7, %v1187_v62  ;;  %815 = vrcp.f32 %v1272_v0 }
 0x27b   :  { %v806_v6 = vpop.eup %805  ;;  %817 = vrcp.f32 %v1267_v61 }
 0x27c   :  { %v808_v10 = vpop.eup %807  ;;  %v556_v13 = vpop.permute.xlu0 %555  ;;  %v412_v17 = vmul.f32 0.6931472, %v806_v6  ;;  %819 = vrcp.f32 %v1276_v1 }
 0x27d   :  { %v442_v11 = vmul.f32 0.6931472, %v808_v10  ;;  %vm560_vm3 = vcmp.eq.s32.totalorder %v1283_v5, %v556_v13  ;;  %v559_v34 = vpop.permute.xlu1 %558  ;;  %vm561_vm4 = vcmp.eq.s32.totalorder %v553_v12, %v556_v13  ;;  %821 = vrcp.f32 %v1270_v63 }
 0x27e   :  { %v1307_v33 = vadd.f32 %v412_v17, %v1199_v8  ;;  %vm562_vm5 = vcmp.eq.s32.totalorder %v1283_v5, %v559_v34  ;;  %vm563_vm6 = vcmp.eq.s32.totalorder %v553_v12, %v559_v34  ;;  %823 = vrcp.f32 %v1278_v2 }
 0x27f   :  { %v810_v14 = vpop.eup %809  ;;  %v445_v20 = vadd.f32 %v442_v11, %v1181_v59  ;;  %v483_v59 = vsub.f32 %v1153_v39, %v1159_v42  ;;  %825 = vrcp.f32 %v1285_v9 }
 0x280   :  { %v444_v16 = vmul.f32 0.6931472, %v810_v14  ;;  %v812_v21 = vpop.eup %811 }
 0x281   :  { %v474_v25 = vmul.f32 0.6931472, %v812_v21  ;;  %v485_v62 = vsub.f32 %v445_v20, %v1290_v18 }
 0x282   :  { %v446_v24 = vadd.f32 %v444_v16, %v1193_v4  ;;  %v977_v4 = vmov 0.0  }
 0x283   :  { %v477_v44 = vadd.f32 %v474_v25, %v1205_v15  ;;  %v728_v47 = vsel %vm560_vm3, 1.0, %v977_v4  ;;  %v487_v50 = vsub.f32 %v481_v22, %v485_v62  ;;  %v488_v53 = vsub.f32 %v482_v23, %v485_v62  ;;  %v814_v13 = vpop.eup %813 }
 0x284   :  { %v729_v39 = vsel %vm561_vm4, 1.0, %v977_v4  ;;  %v486_v40 = vsub.f32 %v446_v24, %v1307_v33  ;;  %v572_v6 = vmul.f32 %v728_v47, %v1142_v28  ;;  %v730_v14 = vsel %vm562_vm5, 1.0, %v977_v4 }
 0x285   :  { %v501_v49 = vmul.f32 %v1217_v26, %v487_v50  ;;  %v502_v8 = vmul.f32 %v1223_v31, %v488_v53  ;;  %v495_v15 = vsub.f32 %v477_v44, %v1290_v18  ;;  %v573_v52 = vmul.f32 %v729_v39, %v1146_v32 }
 0x286   :  { %v489_v60 = vsub.f32 %v483_v59, %v486_v40  ;;  %v490_v3 = vsub.f32 %v484_v41, %v486_v40  ;;  %v731_v12 = vsel %vm563_vm6, 1.0, %v977_v4  ;;  %v476_v16 = vmul.f32 0.6931472, %v814_v13 }
 0x287   :  { %v505_v7 = vadd.f32 %v502_v8, %v501_v49  ;;  %v497_v10 = vsub.f32 %v491_v29, %v495_v15  ;;  %v498_v11 = vsub.f32 %v492_v58, %v495_v15  ;;  %v576_v21 = vadd.f32 %v573_v52, %v572_v6 }
 0x288   :  { %v503_v26 = vmul.f32 %v1227_v35, %v489_v60  ;;  %v504_v31 = vmul.f32 %v1233_v38, %v490_v3  ;;  %v574_v32 = vmul.f32 %v730_v14, %v1159_v42  ;;  %v575_v22 = vmul.f32 %v731_v12, %v1161_v43 }
 0x289   :  { %506 = vadd.xlane.f32.xlu1 %v505_v7  ;;  %v539_v20 = vmul.f32 %v1219_v27, %v497_v10  ;;  %v540_v28 = vmul.f32 %v1221_v30, %v498_v11  ;;  %v478_v24 = vadd.f32 %v476_v16, %v1211_v19  ;;  %v515_v38 = vmul.f32 %v1219_v27, %v487_v50 }
 0x28a   :  { %v508_v17 = vadd.f32 %v504_v31, %v503_v26  ;;  %v579_v35 = vadd.f32 %v575_v22, %v574_v32  ;;  %v516_v25 = vmul.f32 %v1221_v30, %v488_v53  ;;  %v517_v62 = vmul.f32 %v1229_v36, %v489_v60 }
 0x28b   :  { %v543_v23 = vadd.f32 %v540_v28, %v539_v20  ;;  %v518_v59 = vmul.f32 %v1231_v37, %v490_v3  ;;  %v496_v41 = vsub.f32 %v478_v24, %v1307_v33  ;;  %v493_v29 = vsub.f32 %v1173_v54, %v1159_v42 }
 0x28c   :  { %509 = vadd.xlane.f32.xlu0 %v508_v17  ;;  %v519_v34 = vadd.f32 %v516_v25, %v515_v38  ;;  %v494_v19 = vsub.f32 %v1175_v56, %v1161_v43  ;;  %v527_v27 = vmul.f32 %v1239_v45, %v497_v10  ;;  %v528_v30 = vmul.f32 %v1241_v46, %v498_v11 }
 0x28d   :  { %577 = vadd.xlane.f32.xlu1 %v576_v21  ;;  %v522_v44 = vadd.f32 %v518_v59, %v517_v62  ;;  %v499_v47 = vsub.f32 %v493_v29, %v496_v41  ;;  %v1348_v56 = vsel %vm108_vm7, 1.0, %v977_v4  ;;  %v708_v45 = vsel %vm107_vm8, 1.0, %v977_v4 }
 0x28e   :  { %v500_v50 = vsub.f32 %v494_v19, %v496_v41  ;;  %v531_v53 = vadd.f32 %v528_v30, %v527_v27  ;;  %v655_v46 = vsel %vm586_vm9, %v708_v45, 0.0 }
 0x28f   :  { %v529_v58 = vmul.f32 %v1245_v48, %v499_v47  ;;  %v541_v42 = vmul.f32 %v1229_v36, %v499_v47  ;;  %v656_v36 = vsel %vm586_vm9, %v1348_v56, 0.0 }
 0x290   :  { %544 = vadd.xlane.f32.xlu0 %v543_v23  ;;  %v530_v39 = vmul.f32 %v1249_v51, %v500_v50  ;;  %v542_v43 = vmul.f32 %v1231_v37, %v500_v50  ;;  %v1354_v48 = vadd.f32 %v656_v36, %v655_v46  ;;  %v816_v37 = vpop.eup %815 }
 0x291   :  { %580 = vadd.xlane.f32.xlu1 %v579_v35  ;;  %v818_v57 = vpop.eup %817 }
 0x292   :  { %v534_v40 = vadd.f32 %v530_v39, %v529_v58  ;;  %v546_v54 = vadd.f32 %v542_v43, %v541_v42  ;;  %v820_v4 = vpop.eup %819  ;;  %v513_v0 = vsub.f32 0.0, %v818_v57 }
 0x295   :  { %520 = vadd.xlane.f32.xlu1 %v519_v34 }
 0x299   :  { %523 = vadd.xlane.f32.xlu1 %v522_v44 }
 0x29d   :  { %532 = vadd.xlane.f32.xlu1 %v531_v53 }
 0x2a1   :  { %535 = vadd.xlane.f32.xlu1 %v534_v40 }
 0x2a5   :  { %547 = vadd.xlane.f32.xlu1 %v546_v54 }
 0x316   :  { %v507_v51 = vpop.xlane.xlu1 %506 }
 0x317   :  { %v511_v55 = vmul.f32 %v816_v37, %v507_v51 }
 0x319   :  { %v599_v49 = vmul.f32 %v708_v45, %v511_v55  ;;  %v510_v8 = vpop.xlane.xlu0 %509 }
 0x31a   :  { %v578_v15 = vpop.xlane.xlu1 %577  ;;  %v512_v60 = vmul.f32 %v820_v4, %v510_v8 }
 0x31b   :  { %v582_v3 = vsub.f32 %v1290_v18, %v578_v15  ;;  %v601_v1 = vsel %vm586_vm9, %v599_v49, 0.0  ;;  %v822_v18 = vpop.eup %821 }
 0x31c   :  { %v600_v6 = vmul.f32 %v1348_v56, %v512_v60  ;;  %v514_v21 = vsub.f32 0.0, %v822_v18  ;;  %v824_v22 = vpop.eup %823 }
 0x31d   :  { %v545_v7 = vpop.xlane.xlu0 %544  ;;  %v584_v11 = vmul.f32 %v708_v45, %v582_v3  ;;  %v826_v62 = vpop.eup %825 }
 0x31e   :  { %v581_v61 = vpop.xlane.xlu1 %580  ;;  %v549_v52 = vmul.f32 %v545_v7, %v513_v0  ;;  %v602_v10 = vsel %vm586_vm9, %v600_v6, 0.0 }
 0x31f   :  { %v583_v63 = vsub.f32 %v1307_v33, %v581_v61  ;;  %v603_v13 = vadd.f32 %v602_v10, %v601_v1  ;;  %v587_v17 = vsel %vm586_vm9, %v584_v11, 0.0 }
 0x320   :  { %v641_v14 = vmul.f32 %v708_v45, %v549_v52 }
 0x321   :  { %v585_v12 = vmul.f32 %v1348_v56, %v583_v63  ;;  %604 = vadd.xlane.f32.xlu1 %v603_v13 }
 0x322   :  { %v521_v26 = vpop.xlane.xlu1 %520  ;;  %v643_v50 = vsel %vm586_vm9, %v641_v14, 0.0 }
 0x323   :  { %v525_v31 = vmul.f32 %v521_v26, %v513_v0  ;;  %v588_v20 = vsel %vm586_vm9, %v585_v12, 0.0 }
 0x324   :  { %v589_v28 = vadd.f32 %v588_v20, %v587_v17 }
 0x325   :  { %v613_v16 = vmul.f32 %v708_v45, %v525_v31 }
 0x326   :  { %v524_v33 = vpop.xlane.xlu1 %523  ;;  %590 = vadd.xlane.f32.xlu0 %v589_v28 }
 0x327   :  { %v526_v32 = vmul.f32 %v524_v33, %v514_v21  ;;  %v615_v35 = vsel %vm586_vm9, %v613_v16, 0.0 }
 0x329   :  { %v614_v2 = vmul.f32 %v1348_v56, %v526_v32 }
 0x32a   :  { %v533_v23 = vpop.xlane.xlu1 %532 }
 0x32b   :  { %v537_v24 = vmul.f32 %v824_v22, %v533_v23  ;;  %v616_v38 = vsel %vm586_vm9, %v614_v2, 0.0 }
 0x32c   :  { %v617_v25 = vadd.f32 %v616_v38, %v615_v35 }
 0x32d   :  { %v627_v34 = vmul.f32 %v708_v45, %v537_v24 }
 0x32e   :  { %v536_v59 = vpop.xlane.xlu1 %535  ;;  %618 = vadd.xlane.f32.xlu0 %v617_v25 }
 0x32f   :  { %v538_v9 = vmul.f32 %v826_v62, %v536_v59  ;;  %v629_v27 = vsel %vm586_vm9, %v627_v34, 0.0 }
 0x331   :  { %v628_v41 = vmul.f32 %v1348_v56, %v538_v9 }
 0x332   :  { %v548_v29 = vpop.xlane.xlu1 %547 }
 0x333   :  { %v550_v19 = vmul.f32 %v548_v29, %v514_v21  ;;  %v630_v44 = vsel %vm586_vm9, %v628_v41, 0.0 }
 0x334   :  { %v631_v30 = vadd.f32 %v630_v44, %v629_v27 }
 0x335   :  { %v642_v47 = vmul.f32 %v1348_v56, %v550_v19 }
 0x336   :  { %632 = vadd.xlane.f32.xlu1 %v631_v30 }
 0x337   :  { %v644_v53 = vsel %vm586_vm9, %v642_v47, 0.0 }
 0x338   :  { %v645_v58 = vadd.f32 %v644_v53, %v643_v50 }
 0x33a   :  { %658 = vadd.xlane.f32.xlu1 %v1354_v48  ;;  %646 = vadd.xlane.f32.xlu0 %v645_v58 }
 0x3ae   :  { %v605_v39 = vpop.xlane.xlu1 %604 }
 0x3af   :  { %v606_v40 = vrot.slane %v605_v39, 4 }
 0x3b1   :  { %v607_v42 = vadd.f32 %v606_v40, %v605_v39 }
 0x3b3   :  { %v608_v43 = vrot.slane %v607_v42, 2  ;;  %v591_v54 = vpop.xlane.xlu0 %590 }
 0x3b4   :  { %v592_v45 = vrot.slane %v591_v54, 4 }
 0x3b5   :  { %v609_v36 = vadd.f32 %v608_v43, %v607_v42 }
 0x3b6   :  { %v593_v46 = vadd.f32 %v592_v45, %v591_v54 }
 0x3b7   :  { %v610_v55 = vrot.slane %v609_v36, 1 }
 0x3b8   :  { %v594_v37 = vrot.slane %v593_v46, 2 }
 0x3b9   :  { %v611_v15 = vadd.f32 %v610_v55, %v609_v36 }
 0x3ba   :  { %v595_v51 = vadd.f32 %v594_v37, %v593_v46 }
 0x3bb   :  { %v619_v56 = vpop.xlane.xlu0 %618 }
 0x3bc   :  { %v620_v57 = vrot.slane %v619_v56, 4  ;;  %v596_v4 = vrot.slane %v595_v51, 1 }
 0x3be   :  { %v621_v49 = vadd.f32 %v620_v57, %v619_v56  ;;  %v597_v8 = vadd.f32 %v596_v4, %v595_v51 }
 0x3c0   :  { %v622_v60 = vrot.slane %v621_v49, 2  ;;  %732 = vpush %v597_v8 }
 0x3c1   :  { %734 = vpush %v611_v15 }
 0x3c2   :  { %v623_v48 = vadd.f32 %v622_v60, %v621_v49 }
 0x3c3   :  { %v633_v3 = vpop.xlane.xlu1 %632 }
 0x3c4   :  { %v634_v6 = vrot.slane %v633_v3, 4  ;;  %v624_v0 = vrot.slane %v623_v48, 1 }
 0x3c6   :  { %v635_v7 = vadd.f32 %v634_v6, %v633_v3  ;;  %v625_v61 = vadd.f32 %v624_v0, %v623_v48 }
 0x3c7   :  { %v659_v52 = vpop.xlane.xlu1 %658  ;;  %v647_v1 = vpop.xlane.xlu0 %646 }
 0x3c8   :  { %v636_v10 = vrot.slane %v635_v7, 2  ;;  %v660_v11 = vrot.slane %v659_v52, 4  ;;  %v648_v63 = vrot.slane %v647_v1, 4  ;;  %736 = vpush %v625_v61 }
 0x3ca   :  { %v661_v13 = vadd.f32 %v660_v11, %v659_v52  ;;  %v649_v14 = vadd.f32 %v648_v63, %v647_v1  ;;  %v637_v12 = vadd.f32 %v636_v10, %v635_v7 }
 0x3cc   :  { %v662_v18 = vrot.slane %v661_v13, 2  ;;  %v650_v26 = vrot.slane %v649_v14, 2  ;;  %v638_v31 = vrot.slane %v637_v12, 1 }
 0x3ce   :  { %v663_v17 = vadd.f32 %v662_v18, %v661_v13  ;;  %v651_v20 = vadd.f32 %v650_v26, %v649_v14  ;;  %v639_v28 = vadd.f32 %v638_v31, %v637_v12 }
 0x3d0   :  { %738 = vpush %v639_v28  ;;  %v652_v16 = vrot.slane %v651_v20, 1  ;;  %v664_v21 = vrot.slane %v663_v17, 1 }
 0x3d2   :  { %v653_v33 = vadd.f32 %v652_v16, %v651_v20  ;;  %v665_v32 = vadd.f32 %v664_v21, %v663_v17 }
 0x3d4   :  { %740 = vpush %v653_v33 }
 0x3d5   :  { %742 = vpush %v665_v32 }
 0x3f1   :  { %s733_s0 = spop %732 }
 0x3f2   :  { %s735_s30 = spop %734  ;;  %v668_v2 = vstv %s733_s0 }
 0x3f3   :  { %v671_v22 = vstv %s735_s30  ;;  %v669_v24 = vsel %vm667_vm10, %v668_v2, 0.0 }
 0x3f4   :  { %v672_v35 = vsel %vm670_vm11, %v671_v22, 0.0 }
 0x3f5   :  { %v673_v25 = vadd.f32 %v672_v35, %v669_v24 }
 0x3f9   :  { %s737_s11 = spop %736 }
 0x3fa   :  { %v675_v23 = vstv %s737_s11 }
 0x3fb   :  { %v676_v38 = vsel %vm674_vm12, %v675_v23, 0.0 }
 0x3fc   :  { %v677_v59 = vadd.f32 %v676_v38, %v673_v25 }
 0x401   :  { %s739_s12 = spop %738 }
 0x402   :  { %v679_v34 = vstv %s739_s12 }
 0x403   :  { %v680_v62 = vsel %vm678_vm13, %v679_v34, 0.0 }
 0x404   :  { %v681_v9 = vadd.f32 %v680_v62, %v677_v59 }
 0x405   :  { %s741_s13 = spop %740 }
 0x406   :  { %v683_v41 = vstv %s741_s13  ;;  %s743_s5 = spop %742 }
 0x407   :  { %v684_v29 = vsel %vm682_vm14, %v683_v41, 0.0  ;;  %v687_v19 = vstv %s743_s5 }
 0x408   :  { %v685_v27 = vadd.f32 %v684_v29, %v681_v9  ;;  %v688_v44 = vsel %vm686_vm15, %v687_v19, 0.0 }
 0x40a   :  { %v689_v30 = vadd.f32 %v688_v44, %v685_v27 }
 0x40c   :  { %690 = vst [vmem:[#allocation11] sm:$0xff] %v689_v30 }
 0x40d   :  { %948 = shalt.err (!%p945_p2)
}
 0x40e   :  { %s949_s25 = scalar_lea.hbm %s1408_s10, 128 }
 0x40f   :  { %p950_p3 = scmp.ne.s32.totalorder %s1408_s10, %s949_s25  ;;  %p953_p4 = scmp.lt.u32.totalorder %s949_s25, %s1408_s10 }
 0x411   :  { %p955_p5 = pnand %p953_p4, %p950_p3 }
 0x413   :  { %958 = shalt.err (!%p955_p5)
}
 0x414   :  { %700 = dma.vmem_to_hbm [thread:$0]  %s698_s15, 128, %s1408_s10, [#allocation4]  }
 0x415   :  { %965 = dma.done.wait [#allocation4], 128  }
 0x416   :  { %966 = vsyncadd [#allocation4], 4294967168 }
 0x417   :  { %704 = vsyncpa [#allocation3], 1 }
 0x418   :  { %705 = vsyncpa [#allocation6], 1 }
 0x419   :  { %706 = vsyncpa [#allocation9], 1 }
 0x41a   :  { %707 = vsyncpa [#allocation4], 1 }

</bundles_post_ra>
